<compile_context>
chip_gen: v6e
topology: v6e:2x2x1
jax: 0.10.0
libtpu: 0.0.40
codegen_flags: <defaults>
</compile_context>

<pallas_src>
import functools

import jax
import jax.numpy as jnp
from jax import lax
from jax.experimental import pallas as pl
from jax.experimental.pallas import tpu as pltpu

_LOSS_ROWS = 8     # per-tile loss partial block (8, 128): (8,128)-conforming
_LOSS_COLS = 128
_NEG_BIG = -1e30   # finite "-inf" for padded vocab columns (avoid 0 * inf = NaN
                   # inside the one-hot matmul)


def _round_up(x, m):
    return ((x + m - 1) // m) * m


# ---------------------------------------------------------------------------
# VMEM budgeting / tile selection
# ---------------------------------------------------------------------------

def _vmem_budget_bytes():
    """3/4 of this generation's VMEM (leave compiler-scratch headroom)."""
    try:
        cap = int(pltpu.get_tpu_info().vmem_capacity_bytes)
    except Exception:
        cap = 64 * 1024 * 1024          # v7x floor; v5e/v6e have 128 MiB
    return (cap * 3) // 4


def _vmem_need_bytes(tile_n, vp, with_loss):
    table = 2 * vp * vp * 4             # resident table (inputs double-buffer)
    logits = 2 * tile_n * vp * 4        # logits tile (double-buffered output)
    idx = 2 * tile_n * 4                # idx block
    tgt = 2 * tile_n * 4 if with_loss else 0
    loss = 2 * _LOSS_ROWS * _LOSS_COLS * 4 if with_loss else 0
    return table + logits + idx + tgt + loss


def _pick_tile_n(n, vp, with_loss, budget):
    tile = min(1024, _round_up(n, 8))   # big tiles -> near HBM roofline
    while tile > 8 and _vmem_need_bytes(tile, vp, with_loss) > budget:
        tile = _round_up(tile // 2, 8)
    return tile


# ---------------------------------------------------------------------------
# Kernel bodies
# ---------------------------------------------------------------------------

def _gather_tile(idx_ref, table_ref, tile_n, vp):
    """Embedding row gather for one tile as a one-hot MXU matmul.

    idx_ref:   (tile_n, 1) int32 VMEM block of token ids.
    table_ref: (vp, vp)    f32 VMEM-resident padded embedding table.
    Returns (tile_n, vp) f32 logits.  precision=HIGHEST forces an exact f32
    contraction (one-hot coefficients are 0/1, accumulation is f32 on the MXU).
    Out-of-range ids produce an all-zero one-hot row -> zero logits (no OOB).
    """
    tok = idx_ref[...]                                       # (tile_n, 1)
    col = lax.broadcasted_iota(jnp.int32, (tile_n, vp), 1)
    one_hot = (col == tok).astype(jnp.float32)               # (tile_n, vp)
    return jnp.dot(one_hot, table_ref[...],
                   preferred_element_type=jnp.float32,
                   precision=lax.Precision.HIGHEST)


def _tile_nll_sum(logits, tgt_ref, base, n_valid, tile_n, vp):
    """Sum of per-row cross-entropy over the valid rows of one tile (f32).

    Padded vocab columns already hold -1e30 (pre-masked in the wrapper) so no
    extra select is needed inside the logsumexp.  Keep everything f32: v5e has
    no bf16 VPU/EUP.
    """
    col = lax.broadcasted_iota(jnp.int32, (tile_n, vp), 1)
    row_max = jnp.max(logits, axis=-1, keepdims=True)
    lse = jnp.log(jnp.sum(jnp.exp(logits - row_max), axis=-1,
                          keepdims=True)) + row_max           # (tile_n, 1)
    tgt = tgt_ref[...]                                        # (tile_n, 1)
    tgt_logit = jnp.sum(jnp.where(col == tgt, logits, 0.0),
                        axis=-1, keepdims=True)               # (tile_n, 1)
    row_g = lax.broadcasted_iota(jnp.int32, (tile_n, 1), 0) + base
    return jnp.sum(jnp.where(row_g < n_valid, lse - tgt_logit, 0.0))


def _write_loss_block(loss_ref, part):
    # Lane-dense (8,128) block; partial tile sum at [0,0], zeros elsewhere.
    r_i = lax.broadcasted_iota(jnp.int32, (_LOSS_ROWS, _LOSS_COLS), 0)
    c_i = lax.broadcasted_iota(jnp.int32, (_LOSS_ROWS, _LOSS_COLS), 1)
    loss_ref[...] = jnp.where((r_i == 0) & (c_i == 0), part, 0.0)


def _make_gather_kernel(tile_n, vp):
    """Inference path: embedding gather only (no loss)."""

    def kernel(idx_ref, table_ref, logits_ref):
        logits_ref[...] = _gather_tile(idx_ref, table_ref, tile_n, vp)

    return kernel


def _make_train_kernel(n_valid, tile_n, vp, emit_logits):
    """Training path: gather + per-tile cross-entropy partial sum."""

    if emit_logits:
        def kernel(idx_ref, table_ref, tgt_ref, logits_ref, loss_ref):
            base = pl.program_id(0) * tile_n
            logits = _gather_tile(idx_ref, table_ref, tile_n, vp)
            logits_ref[...] = logits
            _write_loss_block(
                loss_ref,
                _tile_nll_sum(logits, tgt_ref, base, n_valid, tile_n, vp))
    else:
        def kernel(idx_ref, table_ref, tgt_ref, loss_ref):
            base = pl.program_id(0) * tile_n
            logits = _gather_tile(idx_ref, table_ref, tile_n, vp)
            _write_loss_block(
                loss_ref,
                _tile_nll_sum(logits, tgt_ref, base, n_valid, tile_n, vp))

    return kernel


# ---------------------------------------------------------------------------
# Wrapper
# ---------------------------------------------------------------------------

def _trim(logits_full, n, v, n_pad, vp):
    # Skip the slice copy entirely when no padding was added.
    if n_pad == n and vp == v:
        return logits_full
    return logits_full[:n, :v]


@functools.partial(jax.jit, static_argnames=("mode",))
def _bigram_impl(table, idx_bt, targets_bt, *, mode):
    # mode: "logits" | "logits_and_loss" | "loss"
    with_loss = mode != "logits"
    B, T = idx_bt.shape
    V = table.shape[0]
    N = B * T

    Vp = _round_up(V, 128)                     # lane-dense, MXU-aligned vocab
    budget = _vmem_budget_bytes()
    TILE_N = _pick_tile_n(N, Vp, with_loss, budget)
    N_pad = _round_up(N, TILE_N)
    num_tiles = N_pad // TILE_N

    # Padded table: extra rows are zero (valid ids never select them), extra
    # columns are -1e30 so they drop out of the logsumexp for free.
    tf32 = table.astype(jnp.float32)
    if Vp != V:
        table_p = jnp.pad(tf32, ((0, Vp - V), (0, 0)))
        table_p = jnp.pad(table_p, ((0, 0), (0, Vp - V)),
                          constant_values=_NEG_BIG)
    else:
        table_p = tf32

    idx_col = idx_bt.reshape(N).astype(jnp.int32)
    if N_pad != N:
        idx_col = jnp.pad(idx_col, (0, N_pad - N))
    idx_col = idx_col.reshape(N_pad, 1)

    idx_spec = pl.BlockSpec((TILE_N, 1), lambda i: (i, 0))
    table_spec = pl.BlockSpec((Vp, Vp), lambda i: (0, 0))     # VMEM-resident
    logits_spec = pl.BlockSpec((TILE_N, Vp), lambda i: (i, 0))

    vmem_need = _vmem_need_bytes(TILE_N, Vp, with_loss) + (2 << 20)
    params = pltpu.CompilerParams(
        dimension_semantics=("parallel",),     # independent tiles (v7x 2 TCs)
        vmem_limit_bytes=int(min(budget, max(4 << 20, vmem_need))))

    if mode == "logits":
        logits_full = pl.pallas_call(
            _make_gather_kernel(TILE_N, Vp),
            out_shape=jax.ShapeDtypeStruct((N_pad, Vp), jnp.float32),
            grid_spec=pltpu.PrefetchScalarGridSpec(
                num_scalar_prefetch=0,
                grid=(num_tiles,),
                in_specs=[idx_spec, table_spec],
                out_specs=logits_spec),
            compiler_params=params,
        )(idx_col, table_p)
        return _trim(logits_full, N, V, N_pad, Vp)

    tgt_col = targets_bt.reshape(N).astype(jnp.int32)
    if N_pad != N:
        tgt_col = jnp.pad(tgt_col, (0, N_pad - N))
    tgt_col = tgt_col.reshape(N_pad, 1)

    tgt_spec = pl.BlockSpec((TILE_N, 1), lambda i: (i, 0))
    loss_spec = pl.BlockSpec((_LOSS_ROWS, _LOSS_COLS), lambda i: (i, 0))
    loss_shape = jax.ShapeDtypeStruct((num_tiles * _LOSS_ROWS, _LOSS_COLS),
                                      jnp.float32)

    if mode == "loss":
        # Loss-only fast path: no (N, V) logits HBM writeback at all.
        loss_parts = pl.pallas_call(
            _make_train_kernel(N, TILE_N, Vp, emit_logits=False),
            out_shape=loss_shape,
            grid_spec=pltpu.PrefetchScalarGridSpec(
                num_scalar_prefetch=0,
                grid=(num_tiles,),
                in_specs=[idx_spec, table_spec, tgt_spec],
                out_specs=loss_spec),
            compiler_params=params,
        )(idx_col, table_p, tgt_col)
        return jnp.sum(loss_parts) / jnp.float32(N)

    logits_full, loss_parts = pl.pallas_call(
        _make_train_kernel(N, TILE_N, Vp, emit_logits=True),
        out_shape=(jax.ShapeDtypeStruct((N_pad, Vp), jnp.float32), loss_shape),
        grid_spec=pltpu.PrefetchScalarGridSpec(
            num_scalar_prefetch=0,
            grid=(num_tiles,),
            in_specs=[idx_spec, table_spec, tgt_spec],
            out_specs=(logits_spec, loss_spec)),
        compiler_params=params,
    )(idx_col, table_p, tgt_col)
    loss = jnp.sum(loss_parts) / jnp.float32(N)   # mean CE (F.cross_entropy)
    return _trim(logits_full, N, V, N_pad, Vp), loss


def bigram_forward(table, idx, targets=None):
    """Pallas equivalent of BigramLanguageModel.forward.

    table:   (V, V) float32 embedding table (row r = embedding of token r).
    idx:     (B, T) int32 token indices.
    targets: optional (B, T) int32 target indices (expected in [0, V)).

    With targets, returns ((B*T, V) logits, scalar mean cross-entropy); without
    targets, returns ((B, T, V) logits, None) — matching the PyTorch module.
    """
    B, T = idx.shape
    V = table.shape[0]
    if targets is None:
        logits2d = _bigram_impl(table, idx, None, mode="logits")
        return logits2d.reshape(B, T, V), None
    return _bigram_impl(table, idx, targets, mode="logits_and_loss")


def bigram_loss(table, idx, targets):
    """Loss-only fast path: skips the (B*T, V) logits HBM writeback."""
    return _bigram_impl(table, idx, targets, mode="loss")


# ---------------------------------------------------------------------------
# Self-test
# ---------------------------------------------------------------------------

def _ref_loss(logits2d, targets):
    return jnp.mean(
        jax.nn.logsumexp(logits2d, axis=-1)
        - jnp.take_along_axis(logits2d, targets.reshape(-1, 1), axis=-1)[:, 0])


if __name__ == "__main__":
    B, T, V = 2, 8, 32   # batch, sequence length, vocab size

    key = jax.random.PRNGKey(0)
    k_table, k_idx, k_tgt = jax.random.split(key, 3)

    # nn.Embedding default init: N(0, 1)
    table = jax.random.normal(k_table, (V, V), dtype=jnp.float32)
    idx = jax.random.randint(k_idx, (B, T), 0, V, dtype=jnp.int32)
    targets = jax.random.randint(k_tgt, (B, T), 0, V, dtype=jnp.int32)

    logits2d, loss = bigram_forward(table, idx, targets)     # training path
    logits3d, loss_none = bigram_forward(table, idx, None)   # inference path
    loss_only = bigram_loss(table, idx, targets)             # loss-only path
    jax.block_until_ready((logits2d, loss, logits3d, loss_only))

    ref3 = table[idx]                       # (B, T, V)
    ref2 = ref3.reshape(B * T, V)
    rloss = _ref_loss(ref2, targets)

    assert logits2d.shape == (B * T, V), "train-path logits shape mismatch"
    assert jnp.allclose(logits2d, ref2, atol=1e-5), "logits mismatch"
    assert jnp.allclose(loss, rloss, atol=1e-5, rtol=1e-5), "loss mismatch"
    assert logits3d.shape == (B, T, V), "inference-path logits shape mismatch"
    assert jnp.allclose(logits3d, ref3, atol=1e-5), "inference logits mismatch"
    assert loss_none is None
    assert jnp.allclose(loss_only, rloss, atol=1e-5, rtol=1e-5), "loss-only mismatch"

    # Second check at a larger shape: exercises the multi-tile grid, row
    # padding (N not a multiple of TILE_N) and vocab-column padding (V < Vp).
    B2, T2, V2 = 3, 500, 65
    k_tb2, k_id2, k_tg2 = jax.random.split(jax.random.PRNGKey(1), 3)
    table2 = jax.random.normal(k_tb2, (V2, V2), dtype=jnp.float32)
    idx2 = jax.random.randint(k_id2, (B2, T2), 0, V2, dtype=jnp.int32)
    tgt2 = jax.random.randint(k_tg2, (B2, T2), 0, V2, dtype=jnp.int32)
    out2, loss2 = bigram_forward(table2, idx2, tgt2)
    jax.block_until_ready((out2, loss2))
    ref2b = table2[idx2].reshape(B2 * T2, V2)
    assert jnp.allclose(out2, ref2b, atol=1e-5), "multi-tile logits mismatch"
    assert jnp.allclose(loss2, _ref_loss(ref2b, tgt2), atol=1e-5, rtol=1e-5), \
        "multi-tile loss mismatch"

    # TODO(synk): generate() (autoregressive sampling with torch.multinomial)
    # is a host-side loop around this forward and is not implemented as a
    # kernel.

    print("KERNEL_OK")
</pallas_src>

<mosaic_0001>
module attributes {stable_mosaic.version = 11 : i64} {
  func.func @kernel(%arg0: i32, %arg1: memref<16x1xi32, #tpu.memory_space<vmem>>, %arg2: memref<128x128xf32, #tpu.memory_space<vmem>>, %arg3: memref<16x1xi32, #tpu.memory_space<vmem>>, %arg4: memref<16x128xf32, #tpu.memory_space<vmem>>, %arg5: memref<8x128xf32, #tpu.memory_space<vmem>>) attributes {dimension_semantics = [#tpu.dimension_semantics<parallel>], iteration_bounds = array<i64: 1>, scalar_prefetch = 0 : i64, scratch_operands = 0 : i64, tpu.core_type = #tpu.core_type<tc>, window_params = [{transform_indices = @transform_0, window_bounds = array<i64: 16, 1>}, {pipeline_mode = #tpu.pipeline_mode<synchronous>, transform_indices = @transform_1, window_bounds = array<i64: 128, 128>}, {transform_indices = @transform_2, window_bounds = array<i64: 16, 1>}, {transform_indices = @transform_3, window_bounds = array<i64: 16, 128>}, {transform_indices = @transform_4, window_bounds = array<i64: 8, 128>}]} {
    %c16_i32 = arith.constant 16 : i32
    %0 = arith.muli %arg0, %c16_i32 : i32
    %c0 = arith.constant 0 : index
    %c0_0 = arith.constant 0 : index
    %1 = vector.load %arg1[%c0, %c0_0] : memref<16x1xi32, #tpu.memory_space<vmem>>, vector<16x1xi32>
    %2 = tpu.iota {dimensions = array<i32: 1>} : vector<16x128xi32>
    %3 = vector.broadcast %1 : vector<16x1xi32> to vector<16x128xi32>
    %4 = arith.cmpi eq, %2, %3 : vector<16x128xi32>
    %5 = arith.extui %4 : vector<16x128xi1> to vector<16x128xi32>
    %6 = arith.sitofp %5 : vector<16x128xi32> to vector<16x128xf32>
    %c0_1 = arith.constant 0 : index
    %c0_2 = arith.constant 0 : index
    %7 = vector.load %arg2[%c0_1, %c0_2] : memref<128x128xf32, #tpu.memory_space<vmem>>, vector<128x128xf32>
    %cst = arith.constant dense<0.000000e+00> : vector<16x128xf32>
    %8 = tpu.matmul %6, %7, %cst {dimension_numbers = #tpu.dot_dimension_numbers<[1], [0], [0], [1], [0, 0, 1, 1], [], []>, precision = #tpu.contract_precision<fp32>} : vector<16x128xf32>, vector<128x128xf32>, vector<16x128xf32> -> vector<16x128xf32>
    %c0_3 = arith.constant 0 : index
    %c0_4 = arith.constant 0 : index
    %9 = vector.load %arg4[%c0_3, %c0_4] : memref<16x128xf32, #tpu.memory_space<vmem>>, vector<16x128xf32>
    tpu.vector_store %arg4[%c0_3, %c0_4], %8 {strides = array<i32>} : memref<16x128xf32, #tpu.memory_space<vmem>>, vector<16x128xf32>,
    %10 = tpu.iota {dimensions = array<i32: 1>} : vector<16x128xi32>
    %cst_5 = arith.constant dense<0xFF800000> : vector<16xf32>
    %11 = vector.multi_reduction <maximumf>, %8, %cst_5 [1] : vector<16x128xf32> to vector<16xf32>
    %12 = vector.shape_cast %11 : vector<16xf32> to vector<16x1xf32>
    %13 = vector.broadcast %12 : vector<16x1xf32> to vector<16x128xf32>
    %14 = arith.subf %8, %13 : vector<16x128xf32>
    %15 = math.exp %14 : vector<16x128xf32>
    %cst_6 = arith.constant dense<0.000000e+00> : vector<16xf32>
    %16 = vector.multi_reduction <add>, %15, %cst_6 [1] : vector<16x128xf32> to vector<16xf32>
    %17 = vector.shape_cast %16 : vector<16xf32> to vector<16x1xf32>
    %18 = math.log %17 : vector<16x1xf32>
    %19 = arith.addf %18, %12 : vector<16x1xf32>
    %c0_7 = arith.constant 0 : index
    %c0_8 = arith.constant 0 : index
    %20 = vector.load %arg3[%c0_7, %c0_8] : memref<16x1xi32, #tpu.memory_space<vmem>>, vector<16x1xi32>
    %21 = vector.broadcast %20 : vector<16x1xi32> to vector<16x128xi32>
    %22 = arith.cmpi eq, %10, %21 : vector<16x128xi32>
    %cst_9 = arith.constant 0.000000e+00 : f32
    %23 = vector.broadcast %cst_9 : f32 to vector<16x128xf32>
    %24 = arith.select %22, %8, %23 : vector<16x128xi1>, vector<16x128xf32>
    %cst_10 = arith.constant dense<0.000000e+00> : vector<16xf32>
    %25 = vector.multi_reduction <add>, %24, %cst_10 [1] : vector<16x128xf32> to vector<16xf32>
    %26 = vector.shape_cast %25 : vector<16xf32> to vector<16x1xf32>
    %27 = tpu.iota {dimensions = array<i32: 0>} : vector<16x1xi32>
    %28 = vector.broadcast %0 : i32 to vector<16x1xi32>
    %29 = arith.addi %27, %28 : vector<16x1xi32>
    %c16_i32_11 = arith.constant 16 : i32
    %30 = vector.broadcast %c16_i32_11 : i32 to vector<16x1xi32>
    %31 = arith.cmpi slt, %29, %30 : vector<16x1xi32>
    %32 = arith.subf %19, %26 : vector<16x1xf32>
    %cst_12 = arith.constant 0.000000e+00 : f32
    %33 = vector.broadcast %cst_12 : f32 to vector<16x1xf32>
    %34 = arith.select %31, %32, %33 : vector<16x1xi1>, vector<16x1xf32>
    %35 = vector.shape_cast %34 : vector<16x1xf32> to vector<1x16x1xf32>
    %cst_13 = arith.constant dense<0.000000e+00> : vector<1xf32>
    %36 = vector.multi_reduction <add>, %35, %cst_13 [1, 2] : vector<1x16x1xf32> to vector<1xf32>
    %37 = vector.shape_cast %36 : vector<1xf32> to vector<1x1x1xf32>
    %38 = vector.extract %37[0, 0, 0] : f32 from vector<1x1x1xf32>
    %39 = tpu.iota {dimensions = array<i32: 0>} : vector<8x128xi32>
    %40 = tpu.iota {dimensions = array<i32: 1>} : vector<8x128xi32>
    %c0_i32 = arith.constant 0 : i32
    %41 = vector.broadcast %c0_i32 : i32 to vector<8x128xi32>
    %42 = arith.cmpi eq, %39, %41 : vector<8x128xi32>
    %c0_i32_14 = arith.constant 0 : i32
    %43 = vector.broadcast %c0_i32_14 : i32 to vector<8x128xi32>
    %44 = arith.cmpi eq, %40, %43 : vector<8x128xi32>
    %45 = arith.andi %42, %44 : vector<8x128xi1>
    %cst_15 = arith.constant 0.000000e+00 : f32
    %46 = vector.broadcast %38 : f32 to vector<8x128xf32>
    %47 = vector.broadcast %cst_15 : f32 to vector<8x128xf32>
    %48 = arith.select %45, %46, %47 : vector<8x128xi1>, vector<8x128xf32>
    %c0_16 = arith.constant 0 : index
    %c0_17 = arith.constant 0 : index
    %49 = vector.load %arg5[%c0_16, %c0_17] : memref<8x128xf32, #tpu.memory_space<vmem>>, vector<8x128xf32>
    tpu.vector_store %arg5[%c0_16, %c0_17], %48 {strides = array<i32>} : memref<8x128xf32, #tpu.memory_space<vmem>>, vector<8x128xf32>,
    return
  }
  func.func @transform_0(%arg0: i32) -> (i32, i32) {
    %c0_i32 = arith.constant 0 : i32
    %c0_i32_0 = arith.constant 0 : i32
    return %arg0, %c0_i32 : i32, i32
  }
  func.func @transform_1(%arg0: i32) -> (i32, i32) {
    %c0_i32 = arith.constant 0 : i32
    %c0_i32_0 = arith.constant 0 : i32
    %c0_i32_1 = arith.constant 0 : i32
    return %c0_i32, %c0_i32_0 : i32, i32
  }
  func.func @transform_2(%arg0: i32) -> (i32, i32) {
    %c0_i32 = arith.constant 0 : i32
    %c0_i32_0 = arith.constant 0 : i32
    return %arg0, %c0_i32 : i32, i32
  }
  func.func @transform_3(%arg0: i32) -> (i32, i32) {
    %c0_i32 = arith.constant 0 : i32
    %c0_i32_0 = arith.constant 0 : i32
    return %arg0, %c0_i32 : i32, i32
  }
  func.func @transform_4(%arg0: i32) -> (i32, i32) {
    %c0_i32 = arith.constant 0 : i32
    %c0_i32_0 = arith.constant 0 : i32
    return %arg0, %c0_i32 : i32, i32
  }
}

</mosaic_0001>

<bundles_post_ra>
// kernel: _bigram_impl.1
= control target key start
LH: loop header
LB: loop body
LE: loop exit
PB: predicated region body
PF: predicated region fallthrough
CT: control target
= control target key end

     0   :  { %v1189_v1 = vmov 0   ;;  %s1656_s0 = inlined_call_operand.vmem [shape: s32[16,1], index: 0, kind: input, shape index: {}]   ;;  %s1657_s1 = inlined_call_operand.vmem [shape: f32[128,128], index: 1, kind: input, shape index: {}]   ;;  %s1658_s2 = inlined_call_operand.vmem [shape: s32[16,1], index: 2, kind: input, shape index: {}]   ;;  %s1659_s3 = inlined_call_operand.hbm [shape: f32[16,128], index: 3, kind: output, shape index: {0}]   ;;  %s1660_s4 = inlined_call_operand.vmem [shape: f32[8,128], index: 4, kind: output, shape index: {1}]  }
   0x1   :  { %v18_v0 = vld [vmem:[%s1656_s0] sm:$0xff]  ;;  %1157 = vset.pattern.permute.xlu0 %v1189_v1  ;;  %v49_v2 = vld [vmem:[%s1657_s1 + $0x78] sm:$0xff]  ;;  %v48_v3 = vld [vmem:[%s1657_s1 + $0x70] sm:$0xff]  ;;  %1158 = vset.pattern.permute.xlu1 %v1189_v1 }
   0x2   :  { %v47_v4 = vld [vmem:[%s1657_s1 + $0x68] sm:$0xff]  ;;  %23 = vperm.xlu0 %1157, %v18_v0   ;;  %v1232_v5 = vand.u32 4294901760, %v49_v2  ;;  %v1234_v6 = vand.u32 4294901760, %v48_v3  ;;  %v46_v8 = vld [vmem:[%s1657_s1 + $0x60] sm:$0xff]  ;;  %v45_v9 = vld [vmem:[%s1657_s1 + $0x58] sm:$0xff] }
   0x3   :  { %v1236_v7 = vand.u32 4294901760, %v47_v4  ;;  %v44_v10 = vld [vmem:[%s1657_s1 + $0x50] sm:$0xff]  ;;  %v19_v11 = vld [vmem:[%s1656_s0 + $0x8] sm:$0xff]  ;;  %v1250_v12 = vand.u32 4294901760, %v46_v8  ;;  %v1252_v13 = vand.u32 4294901760, %v45_v9  ;;  %v42_v16 = vld [vmem:[%s1657_s1 + $0x40] sm:$0xff] }
   0x4   :  { %v1254_v14 = vand.u32 4294901760, %v44_v10  ;;  %v43_v15 = vld [vmem:[%s1657_s1 + $0x48] sm:$0xff]  ;;  %v1263_v17 = vsub.f32 %v49_v2, %v1232_v5  ;;  %v1266_v18 = vsub.f32 %v48_v3, %v1234_v6  ;;  %939 = vmatprep.subr.mxu0 %v1232_v5  ;;  %v1284_v24 = vand.u32 4294901760, %v42_v16 }
   0x5   :  { %v1269_v19 = vsub.f32 %v47_v4, %v1236_v7  ;;  %v1272_v20 = vand.u32 4294901760, %v43_v15  ;;  %v1275_v21 = vsub.f32 %v46_v8, %v1250_v12  ;;  %v1278_v22 = vsub.f32 %v45_v9, %v1252_v13  ;;  %940 = vmatpush3.msra.mxu0 %v1232_v5 }
   0x6   :  { %v1282_v23 = vsub.f32 %v44_v10, %v1254_v14  ;;  %26 = vperm.xlu0 %1157, %v19_v11   ;;  %v1287_v25 = vand.u32 4294901760, %v1263_v17  ;;  %v1290_v26 = vand.u32 4294901760, %v1266_v18  ;;  %941 = vmatprep.subr.mxu0 %v1234_v6 }
   0x7   :  { %v1293_v27 = vand.u32 4294901760, %v1269_v19 }
   0x8   :  { %10 = vsyncpa [#allocation3], 0  ;;  %v756_v28 = vld [vmem:[%s1658_s2] sm:$0xff]  ;;  %v1300_v29 = vand.u32 4294901760, %v1275_v21  ;;  %v1303_v30 = vand.u32 4294901760, %v1278_v22  ;;  %942 = vmatpush3.msra.mxu0 %v1234_v6  ;;  %v1307_v31 = vsub.f32 %v43_v15, %v1272_v20  ;;  %v155_v32 = vsub.f32 %v1263_v17, %v1287_v25  ;;  %v41_v37 = vld [vmem:[%s1657_s1 + $0x38] sm:$0xff] }
   0x9   :  { %v162_v33 = vsub.f32 %v1266_v18, %v1290_v26  ;;  %v169_v34 = vsub.f32 %v1269_v19, %v1293_v27  ;;  %943 = vmatprep.subr.mxu0 %v1236_v7  ;;  %v1317_v35 = vand.u32 4294901760, %v1282_v23  ;;  %v1321_v36 = vsub.f32 %v42_v16, %v1284_v24  ;;  %v40_v38 = vld [vmem:[%s1657_s1 + $0x30] sm:$0xff]  ;;  %v39_v39 = vld [vmem:[%s1657_s1 + $0x28] sm:$0xff]  ;;  %v38_v45 = vld [vmem:[%s1657_s1 + $0x20] sm:$0xff] }
   0xa   :  { %944 = vmatpush3.msra.mxu0 %v1236_v7  ;;  %759 = vperm.xlu0 %1157, %v756_v28   ;;  %v156_v40 = vand.u32 4294901760, %v155_v32  ;;  %v176_v42 = vsub.f32 %v1275_v21, %v1300_v29  ;;  %v183_v43 = vsub.f32 %v1278_v22, %v1303_v30  ;;  %v1338_v44 = vand.u32 4294901760, %v1307_v31  ;;  %v37_v52 = vld [vmem:[%s1657_s1 + $0x18] sm:$0xff]  ;;  %v36_v58 = vld [vmem:[%s1657_s1 + $0x10] sm:$0xff]  ;;  %v35_v0 = vld [vmem:[%s1657_s1 + $0x8] sm:$0xff] }
   0xb   :  { %v163_v41 = vand.u32 4294901760, %v162_v33  ;;  %945 = vmatprep.subr.mxu0 %v1250_v12  ;;  %v170_v46 = vand.u32 4294901760, %v169_v34  ;;  %v1344_v47 = vand.u32 4294901760, %v41_v37  ;;  %v1347_v48 = vand.u32 4294901760, %v40_v38  ;;  %v34_v9 = vld [vmem:[%s1657_s1] sm:$0xff] }
   0xc   :  { %946 = vmatpush3.msra.mxu0 %v1250_v12  ;;  %974 = vmatprep.subr.mxu1 %v156_v40  ;;  %v1349_v49 = vand.u32 4294901760, %v39_v39  ;;  %v190_v50 = vsub.f32 %v1282_v23, %v1317_v35  ;;  %v1354_v51 = vand.u32 4294901760, %v1321_v36  ;;  %v177_v53 = vand.u32 4294901760, %v176_v42 }
   0xd   :  { %947 = vmatprep.subr.mxu0 %v1252_v13  ;;  %975 = vmatpush3.msra.mxu1 %v156_v40  ;;  %v1361_v54 = vsub.f32 %v41_v37, %v1344_v47  ;;  %v1364_v55 = vsub.f32 %v40_v38, %v1347_v48  ;;  %v1367_v56 = vand.u32 4294901760, %v38_v45  ;;  %v197_v57 = vsub.f32 %v1307_v31, %v1338_v44 }
   0xe   :  { %948 = vmatpush3.msra.mxu0 %v1252_v13  ;;  %976 = vmatprep.subr.mxu1 %v163_v41  ;;  %v184_v59 = vand.u32 4294901760, %v183_v43  ;;  %v1379_v61 = vsub.f32 %v39_v39, %v1349_v49  ;;  %v1382_v62 = vand.u32 4294901760, %v37_v52  ;;  %v204_v63 = vsub.f32 %v1321_v36, %v1354_v51 }
   0xf   :  { %949 = vmatprep.subr.mxu0 %v1254_v14  ;;  %977 = vmatpush3.msra.mxu1 %v163_v41  ;;  %v1376_v60 = vand.u32 4294901760, %v1361_v54  ;;  %v191_v1 = vand.u32 4294901760, %v190_v50  ;;  %v1391_v2 = vand.u32 4294901760, %v1364_v55  ;;  %v1394_v3 = vsub.f32 %v38_v45, %v1367_v56 }
  0x10   :  { %950 = vmatpush3.msra.mxu0 %v1254_v14  ;;  %978 = vmatprep.subr.mxu1 %v170_v46  ;;  %v1397_v4 = vand.u32 4294901760, %v36_v58  ;;  %v198_v8 = vand.u32 4294901760, %v197_v57  ;;  %v1406_v11 = vand.u32 4294901760, %v1379_v61  ;;  %v1409_v15 = vsub.f32 %v37_v52, %v1382_v62 }
  0x11   :  { %951 = vmatprep.subr.mxu0 %v1272_v20  ;;  %979 = vmatpush3.msra.mxu1 %v170_v46  ;;  %v211_v10 = vsub.f32 %v1361_v54, %v1376_v60  ;;  %v1412_v16 = vand.u32 4294901760, %v35_v0  ;;  %v205_v28 = vand.u32 4294901760, %v204_v63  ;;  %v218_v32 = vsub.f32 %v1364_v55, %v1391_v2 }
  0x12   :  { %952 = vmatpush3.msra.mxu0 %v1272_v20  ;;  %980 = vmatprep.subr.mxu1 %v177_v53  ;;  %v1418_v33 = vand.u32 4294901760, %v1394_v3  ;;  %v1421_v34 = vsub.f32 %v36_v58, %v1397_v4  ;;  %v1424_v37 = vand.u32 4294901760, %v34_v9  ;;  %v225_v39 = vsub.f32 %v1379_v61, %v1406_v11 }
  0x13   :  { %953 = vmatprep.subr.mxu0 %v1284_v24  ;;  %981 = vmatpush3.msra.mxu1 %v177_v53  ;;  %v212_v38 = vand.u32 4294901760, %v211_v10  ;;  %v1430_v40 = vand.u32 4294901760, %v1409_v15  ;;  %v1433_v41 = vsub.f32 %v35_v0, %v1412_v16  ;;  %v219_v42 = vand.u32 4294901760, %v218_v32 }
  0x14   :  { %954 = vmatpush3.msra.mxu0 %v1284_v24  ;;  %982 = vmatprep.subr.mxu1 %v184_v59  ;;  %v232_v43 = vsub.f32 %v1394_v3, %v1418_v33  ;;  %v1440_v45 = vand.u32 4294901760, %v1421_v34  ;;  %v1443_v46 = vsub.f32 %v34_v9, %v1424_v37  ;;  %v226_v50 = vand.u32 4294901760, %v225_v39 }
  0x15   :  { %955 = vmatprep.subr.mxu0 %v1344_v47  ;;  %983 = vmatpush3.msra.mxu1 %v184_v59  ;;  %v239_v52 = vsub.f32 %v1409_v15, %v1430_v40  ;;  %v1450_v53 = vand.u32 4294901760, %v1433_v41  ;;  %v1190_v39 = vmov 0.0   ;;  %vm784_vm4 = vcmask 7168  }
  0x16   :  { %956 = vmatpush3.msra.mxu0 %v1344_v47  ;;  %984 = vmatprep.subr.mxu1 %v191_v1  ;;  %v233_v57 = vand.u32 4294901760, %v232_v43  ;;  %v246_v58 = vsub.f32 %v1421_v34, %v1440_v45  ;;  %v1457_v59 = vand.u32 4294901760, %v1443_v46  ;;  %v1191_v43 = vmov 1.0  }
  0x17   :  { %957 = vmatprep.subr.mxu0 %v1347_v48  ;;  %985 = vmatpush3.msra.mxu1 %v191_v1  ;;  %v240_v63 = vand.u32 4294901760, %v239_v52  ;;  %v253_v0 = vsub.f32 %v1433_v41, %v1450_v53 }
  0x18   :  { %958 = vmatpush3.msra.mxu0 %v1347_v48  ;;  %986 = vmatprep.subr.mxu1 %v198_v8  ;;  %v247_v1 = vand.u32 4294901760, %v246_v58 }
  0x19   :  { %959 = vmatprep.subr.mxu0 %v1349_v49  ;;  %987 = vmatpush3.msra.mxu1 %v198_v8  ;;  %v260_v8 = vsub.f32 %v1443_v46, %v1457_v59  ;;  %v254_v9 = vand.u32 4294901760, %v253_v0 }
  0x1a   :  { %960 = vmatpush3.msra.mxu0 %v1349_v49  ;;  %988 = vmatprep.subr.mxu1 %v205_v28 }
  0x1b   :  { %961 = vmatprep.subr.mxu0 %v1367_v56  ;;  %989 = vmatpush3.msra.mxu1 %v205_v28  ;;  %v261_v10 = vand.u32 4294901760, %v260_v8  ;;  %v20_v28 = vlaneseq }
  0x1c   :  { %962 = vmatpush3.msra.mxu0 %v1367_v56  ;;  %990 = vmatprep.subr.mxu1 %v212_v38 }
  0x1d   :  { %963 = vmatprep.subr.mxu0 %v1382_v62  ;;  %991 = vmatpush3.msra.mxu1 %v212_v38  ;;  %v1472_v32 = vand.u32 127, %v20_v28 }
  0x1e   :  { %964 = vmatpush3.msra.mxu0 %v1382_v62  ;;  %992 = vmatprep.subr.mxu1 %v219_v42 }
  0x1f   :  { %965 = vmatprep.subr.mxu0 %v1397_v4  ;;  %993 = vmatpush3.msra.mxu1 %v219_v42 }
  0x20   :  { %966 = vmatpush3.msra.mxu0 %v1397_v4  ;;  %994 = vmatprep.subr.mxu1 %v226_v50 }
  0x21   :  { %967 = vmatprep.subr.mxu0 %v1412_v16  ;;  %995 = vmatpush3.msra.mxu1 %v226_v50 }
  0x22   :  { %968 = vmatpush3.msra.mxu0 %v1412_v16  ;;  %996 = vmatprep.subr.mxu1 %v233_v57 }
  0x23   :  { %969 = vmatprep.subr.mxu0 %v1424_v37  ;;  %997 = vmatpush3.msra.mxu1 %v233_v57 }
  0x24   :  { %970 = vmatpush3.msra.mxu0 %v1424_v37  ;;  %998 = vmatprep.subr.mxu1 %v240_v63 }
  0x25   :  { %1009 = vmatprep.subr.mxu0 %v1263_v17  ;;  %999 = vmatpush3.msra.mxu1 %v240_v63 }
  0x26   :  { %1000 = vmatprep.subr.mxu1 %v247_v1 }
  0x27   :  { %1001 = vmatpush3.msra.mxu1 %v247_v1 }
  0x28   :  { %1002 = vmatprep.subr.mxu1 %v254_v9 }
  0x29   :  { %1003 = vmatpush3.msra.mxu1 %v254_v9 }
  0x2a   :  { %1004 = vmatprep.subr.mxu1 %v261_v10 }
  0x2b   :  { %1005 = vmatpush3.msra.mxu1 %v261_v10 }
  0x2c   :  { %1044 = vmatprep.subr.mxu1 %v1232_v5 }
  0x7d   :  { %v1474_v38 = vpop.permute.xlu0 %23 }
  0x7e   :  { %vm28_vm0 = vcmp.eq.s32.totalorder %v1472_v32, %v1474_v38 }
  0x7f   :  { %v823_v42 = vsel %vm28_vm0, 1.0, %v1190_v39  ;;  %1006 = vmatprep.mubr.msk.f32.mxu1 %vm28_vm0, %v1191_v43 }
  0x80   :  { %v132_v50 = vsub.f32 %v823_v42, %v823_v42 }
  0x81   :  { %v1485_v52 = vpop.permute.xlu0 %26 }
  0x82   :  { %vm29_vm1 = vcmp.eq.s32.totalorder %v1472_v32, %v1485_v52  ;;  %v133_v57 = vand.u32 4294901760, %v132_v50 }
  0x83   :  { %v824_v58 = vsel %vm29_vm1, 1.0, %v1190_v39  ;;  %1007 = vmatmul.mubr.msk.f32.vlgmr.msra.gmra.mxu1 %vm29_vm1, %v1191_v43 }
  0x84   :  { %v1496_v63 = vsub.f32 %v824_v58, %v824_v58  ;;  %1045 = vmatpush3.msra.mxu1 %v1232_v5  ;;  %1076 = vmatprep.mubr.f32.mxu1 %v133_v57  ;;  %v134_v0 = vsub.f32 %v132_v50, %v133_v57 }
  0x85   :  { %1046 = vmatprep.subr.mxu1 %v1234_v6 }
  0x86   :  { %1047 = vmatpush3.msra.mxu1 %v1234_v6  ;;  %v135_v1 = vand.u32 4294901760, %v134_v0  ;;  %v143_v8 = vand.u32 4294901760, %v1496_v63 }
  0x87   :  { %1048 = vmatprep.subr.mxu1 %v1236_v7 }
  0x88   :  { %1049 = vmatpush3.msra.mxu1 %v1236_v7  ;;  %971 = vmatprep.mubr.f32.mxu0 %v135_v1  ;;  %v144_v9 = vsub.f32 %v1496_v63, %v143_v8 }
  0x89   :  { %1050 = vmatprep.subr.mxu1 %v1250_v12 }
  0x8a   :  { %1051 = vmatpush3.msra.mxu1 %v1250_v12  ;;  %v145_v10 = vand.u32 4294901760, %v144_v9 }
  0x8b   :  { %1052 = vmatprep.subr.mxu1 %v1252_v13 }
  0x8c   :  { %1053 = vmatpush3.msra.mxu1 %v1252_v13  ;;  %972 = vmatmul.mubr.f32.vlgmr.msra.gmra.mxu0 %v145_v10 }
  0x8d   :  { %1010 = vmatpush3.msra.mxu0 %v1263_v17  ;;  %1054 = vmatprep.subr.mxu1 %v1254_v14 }
  0x8e   :  { %1011 = vmatprep.subr.mxu0 %v1266_v18  ;;  %1041 = vmatprep.mubr.f32.mxu0 %v132_v50 }
  0x8f   :  { %1055 = vmatpush3.msra.mxu1 %v1254_v14  ;;  %1012 = vmatpush3.msra.mxu0 %v1266_v18 }
  0x90   :  { %1056 = vmatprep.subr.mxu1 %v1272_v20  ;;  %1013 = vmatprep.subr.mxu0 %v1269_v19 }
  0x91   :  { %1057 = vmatpush3.msra.mxu1 %v1272_v20  ;;  %1014 = vmatpush3.msra.mxu0 %v1269_v19 }
  0x92   :  { %1058 = vmatprep.subr.mxu1 %v1284_v24  ;;  %1015 = vmatprep.subr.mxu0 %v1275_v21 }
  0x93   :  { %1059 = vmatpush3.msra.mxu1 %v1284_v24  ;;  %1016 = vmatpush3.msra.mxu0 %v1275_v21 }
  0x94   :  { %1060 = vmatprep.subr.mxu1 %v1344_v47  ;;  %1017 = vmatprep.subr.mxu0 %v1278_v22 }
  0x95   :  { %1061 = vmatpush3.msra.mxu1 %v1344_v47  ;;  %1018 = vmatpush3.msra.mxu0 %v1278_v22 }
  0x96   :  { %1062 = vmatprep.subr.mxu1 %v1347_v48  ;;  %1019 = vmatprep.subr.mxu0 %v1282_v23 }
  0x97   :  { %1063 = vmatpush3.msra.mxu1 %v1347_v48  ;;  %1020 = vmatpush3.msra.mxu0 %v1282_v23 }
  0x98   :  { %1064 = vmatprep.subr.mxu1 %v1349_v49  ;;  %1021 = vmatprep.subr.mxu0 %v1307_v31 }
  0x99   :  { %1065 = vmatpush3.msra.mxu1 %v1349_v49  ;;  %1022 = vmatpush3.msra.mxu0 %v1307_v31 }
  0x9a   :  { %1066 = vmatprep.subr.mxu1 %v1367_v56  ;;  %1023 = vmatprep.subr.mxu0 %v1321_v36 }
  0x9b   :  { %1067 = vmatpush3.msra.mxu1 %v1367_v56  ;;  %1024 = vmatpush3.msra.mxu0 %v1321_v36 }
  0x9c   :  { %1068 = vmatprep.subr.mxu1 %v1382_v62  ;;  %1025 = vmatprep.subr.mxu0 %v1361_v54 }
  0x9d   :  { %1069 = vmatpush3.msra.mxu1 %v1382_v62  ;;  %1026 = vmatpush3.msra.mxu0 %v1361_v54 }
  0x9e   :  { %1070 = vmatprep.subr.mxu1 %v1397_v4  ;;  %1027 = vmatprep.subr.mxu0 %v1364_v55 }
  0x9f   :  { %1071 = vmatpush3.msra.mxu1 %v1397_v4  ;;  %1028 = vmatpush3.msra.mxu0 %v1364_v55 }
  0xa0   :  { %1072 = vmatprep.subr.mxu1 %v1412_v16  ;;  %1029 = vmatprep.subr.mxu0 %v1379_v61 }
  0xa1   :  { %1073 = vmatpush3.msra.mxu1 %v1412_v16  ;;  %1030 = vmatpush3.msra.mxu0 %v1379_v61 }
  0xa2   :  { %1074 = vmatprep.subr.mxu1 %v1424_v37  ;;  %1031 = vmatprep.subr.mxu0 %v1394_v3 }
  0xa3   :  { %1075 = vmatpush3.msra.mxu1 %v1424_v37  ;;  %1032 = vmatpush3.msra.mxu0 %v1394_v3 }
  0xa4   :  { %1077 = vmatmul.mubr.f32.vlgmr.msra.gmra.mxu1 %v143_v8  ;;  %1114 = vmatprep.subr.mxu1 %v1232_v5 }
  0xa5   :  { %1033 = vmatprep.subr.mxu0 %v1409_v15  ;;  %1115 = vmatpush3.msra.mxu1 %v1232_v5 }
  0xa6   :  { %1146 = vmatprep.mubr.msk.f32.mxu1 %vm28_vm0, %v1191_v43  ;;  %1034 = vmatpush3.msra.mxu0 %v1409_v15 }
  0xa7   :  { %1116 = vmatprep.subr.mxu1 %v1234_v6  ;;  %1035 = vmatprep.subr.mxu0 %v1421_v34 }
  0xa8   :  { %1117 = vmatpush3.msra.mxu1 %v1234_v6  ;;  %1036 = vmatpush3.msra.mxu0 %v1421_v34 }
  0xa9   :  { %1118 = vmatprep.subr.mxu1 %v1236_v7  ;;  %1037 = vmatprep.subr.mxu0 %v1433_v41 }
  0xaa   :  { %1119 = vmatpush3.msra.mxu1 %v1236_v7  ;;  %1038 = vmatpush3.msra.mxu0 %v1433_v41 }
  0xab   :  { %1120 = vmatprep.subr.mxu1 %v1250_v12  ;;  %1039 = vmatprep.subr.mxu0 %v1443_v46 }
  0xac   :  { %1121 = vmatpush3.msra.mxu1 %v1250_v12  ;;  %1040 = vmatpush3.msra.mxu0 %v1443_v46 }
  0xad   :  { %1122 = vmatprep.subr.mxu1 %v1252_v13  ;;  %1042 = vmatmul.mubr.f32.vlgmr.msra.gmra.mxu0 %v1496_v63 }
  0xae   :  { %1079 = vmatprep.subr.mxu0 %v1287_v25  ;;  %1123 = vmatpush3.msra.mxu1 %v1252_v13 }
  0xaf   :  { %1080 = vmatpush3.msra.mxu0 %v1287_v25  ;;  %1111 = vmatprep.mubr.msk.f32.mxu0 %vm28_vm0, %v1191_v43 }
  0xb0   :  { %1124 = vmatprep.subr.mxu1 %v1254_v14  ;;  %1081 = vmatprep.subr.mxu0 %v1290_v26 }
  0xb1   :  { %1125 = vmatpush3.msra.mxu1 %v1254_v14  ;;  %1082 = vmatpush3.msra.mxu0 %v1290_v26 }
  0xb2   :  { %1126 = vmatprep.subr.mxu1 %v1272_v20  ;;  %1083 = vmatprep.subr.mxu0 %v1293_v27 }
  0xb3   :  { %1127 = vmatpush3.msra.mxu1 %v1272_v20  ;;  %1084 = vmatpush3.msra.mxu0 %v1293_v27 }
  0xb4   :  { %1128 = vmatprep.subr.mxu1 %v1284_v24  ;;  %1085 = vmatprep.subr.mxu0 %v1300_v29 }
  0xb5   :  { %1129 = vmatpush3.msra.mxu1 %v1284_v24  ;;  %1086 = vmatpush3.msra.mxu0 %v1300_v29 }
  0xb6   :  { %1130 = vmatprep.subr.mxu1 %v1344_v47  ;;  %1087 = vmatprep.subr.mxu0 %v1303_v30 }
  0xb7   :  { %1131 = vmatpush3.msra.mxu1 %v1344_v47  ;;  %1088 = vmatpush3.msra.mxu0 %v1303_v30 }
  0xb8   :  { %1132 = vmatprep.subr.mxu1 %v1347_v48  ;;  %1089 = vmatprep.subr.mxu0 %v1317_v35 }
  0xb9   :  { %1133 = vmatpush3.msra.mxu1 %v1347_v48  ;;  %1090 = vmatpush3.msra.mxu0 %v1317_v35 }
  0xba   :  { %1134 = vmatprep.subr.mxu1 %v1349_v49  ;;  %1091 = vmatprep.subr.mxu0 %v1338_v44 }
  0xbb   :  { %1135 = vmatpush3.msra.mxu1 %v1349_v49  ;;  %1092 = vmatpush3.msra.mxu0 %v1338_v44  ;;  %v757_v44 = vld [vmem:[%s1658_s2 + $0x8] sm:$0xff]  ;;  %s1192_s2 = smov [#allocation2]  }
  0xbc   :  { %1136 = vmatprep.subr.mxu1 %v1367_v56  ;;  %1093 = vmatprep.subr.mxu0 %v1354_v51  ;;  %s808_s27 = sshll.u32 %s1192_s2, 4  ;;  %s809_s27 = int_to_ptr.vmem [resolvable:$true] %s808_s27 }
  0xbd   :  { %1137 = vmatpush3.msra.mxu1 %v1367_v56  ;;  %1094 = vmatpush3.msra.mxu0 %v1354_v51  ;;  %s1167_s28 = scalar_lea.vmem %s809_s27, 256  ;;  %p1172_p1 = scmp.lt.s32.totalorder %s809_s27, %s809_s27 }
  0xbe   :  { %1138 = vmatprep.subr.mxu1 %v1382_v62  ;;  %1095 = vmatprep.subr.mxu0 %v1376_v60  ;;  %p1168_p0 = scmp.ne.s32.totalorder %s809_s27, %s1167_s28  ;;  %p1173_p2 = scmp.lt.s32.totalorder %s1167_s28, %s1167_s28 }
  0xbf   :  { %1139 = vmatpush3.msra.mxu1 %v1382_v62  ;;  %1096 = vmatpush3.msra.mxu0 %v1376_v60  ;;  %v760_v60 = vpop.permute.xlu0 %759 }
  0xc0   :  { %1140 = vmatprep.subr.mxu1 %v1397_v4  ;;  %1097 = vmatprep.subr.mxu0 %v1391_v2  ;;  %vm764_vm2 = vcmp.eq.s32.totalorder %v1472_v32, %v760_v60  ;;  %p1174_p3 = por %p1173_p2, %p1172_p1 }
  0xc1   :  { %1141 = vmatpush3.msra.mxu1 %v1397_v4  ;;  %1098 = vmatpush3.msra.mxu0 %v1391_v2 }
  0xc2   :  { %1142 = vmatprep.subr.mxu1 %v1412_v16  ;;  %1099 = vmatprep.subr.mxu0 %v1406_v11  ;;  %p1175_p4 = pnand %p1174_p3, %p1168_p0 }
  0xc3   :  { %1143 = vmatpush3.msra.mxu1 %v1412_v16  ;;  %1100 = vmatpush3.msra.mxu0 %v1406_v11 }
  0xc4   :  { %1144 = vmatprep.subr.mxu1 %v1424_v37  ;;  %1101 = vmatprep.subr.mxu0 %v1418_v33 }
  0xc5   :  { %1145 = vmatpush3.msra.mxu1 %v1424_v37  ;;  %1102 = vmatpush3.msra.mxu0 %v1418_v33 }
  0xc6   :  { %1147 = vmatmul.mubr.msk.f32.vlgmr.msra.gmra.mxu1 %vm29_vm1, %v1191_v43  ;;  %1103 = vmatprep.subr.mxu0 %v1430_v40 }
  0xc7   :  { %1104 = vmatpush3.msra.mxu0 %v1430_v40 }
  0xc8   :  { %1105 = vmatprep.subr.mxu0 %v1440_v45 }
  0xc9   :  { %1106 = vmatpush3.msra.mxu0 %v1440_v45 }
  0xca   :  { %1107 = vmatprep.subr.mxu0 %v1450_v53 }
  0xcb   :  { %1108 = vmatpush3.msra.mxu0 %v1450_v53 }
  0xcc   :  { %1109 = vmatprep.subr.mxu0 %v1457_v59 }
  0xcd   :  { %1110 = vmatpush3.msra.mxu0 %v1457_v59 }
  0xce   :  { %1112 = vmatmul.mubr.msk.f32.vlgmr.msra.gmra.mxu0 %vm29_vm1, %v1191_v43 }
 0x143   :  { %v1008_v6 = vpop.f32.mrf.mxu1 }
 0x145   :  { %v298_v13 = vpop.f32.mrf.mxu1 }
 0x14c   :  { %v973_v5 = vpop.f32.mrf.mxu0 }
 0x14d   :  { %v305_v14 = vadd.f32 %v1008_v6, %v973_v5 }
 0x14e   :  { %v137_v7 = vpop.f32.mrf.mxu0 }
 0x14f   :  { %v299_v19 = vadd.f32 %v298_v13, %v137_v7 }
 0x164   :  { %v1078_v17 = vpop.f32.mrf.mxu1 }
 0x166   :  { %v504_v22 = vpop.f32.mrf.mxu1 }
 0x16d   :  { %v1043_v12 = vpop.f32.mrf.mxu0 }
 0x16e   :  { %v416_v20 = vadd.f32 %v1043_v12, %v305_v14 }
 0x16f   :  { %v408_v18 = vpop.f32.mrf.mxu0 }
 0x170   :  { %v409_v21 = vadd.f32 %v408_v18, %v299_v19  ;;  %v513_v23 = vadd.f32 %v1078_v17, %v416_v20 }
 0x172   :  { %v505_v27 = vadd.f32 %v504_v22, %v409_v21 }
 0x186   :  { %v1148_v24 = vpop.f32.mrf.mxu1 }
 0x188   :  { %v724_v35 = vpop.f32.mrf.mxu1 }
 0x18e   :  { %v1113_v25 = vpop.f32.mrf.mxu0 }
 0x18f   :  { %v638_v26 = vadd.f32 %v1113_v25, %v513_v23 }
 0x190   :  { %v631_v29 = vpop.f32.mrf.mxu0 }
 0x191   :  { %v731_v30 = vadd.f32 %v1148_v24, %v638_v26  ;;  %v632_v31 = vadd.f32 %v631_v29, %v505_v27 }
 0x193   :  { %735 = vst [vmem:[#allocation2 + $0x8] sm:$0xff] %v731_v30  ;;  %v725_v36 = vadd.f32 %v724_v35, %v632_v31 }
 0x195   :  { %734 = vst [vmem:[#allocation2] sm:$0xff] %v725_v36  ;;  %736 = vmax.xlane.f32.xlu1 %v725_v36  ;;  %v766_v2 = vsel %vm764_vm2, %v725_v36, 0.0 }
 0x199   :  { %738 = vmax.xlane.f32.xlu1 %v731_v30 }
 0x1aa   :  { %762 = vperm.xlu1 %1158, %v757_v44  }
 0x21e   :  { %v737_v47 = vpop.xlane.xlu1 %736 }
 0x21f   :  { %v740_v48 = vsub.f32 %v725_v36, %v737_v47 }
 0x221   :  { %v742_v49 = vmul.f32 1.442695, %v740_v48 }
 0x222   :  { %v739_v51 = vpop.xlane.xlu1 %738 }
 0x223   :  { %1159 = vpow2.f32 %v742_v49  ;;  %v741_v54 = vsub.f32 %v731_v30, %v739_v51 }
 0x225   :  { %v744_v55 = vmul.f32 1.442695, %v741_v54 }
 0x226   :  { %v763_v61 = vpop.permute.xlu1 %762 }
 0x227   :  { %1161 = vpow2.f32 %v744_v55  ;;  %vm765_vm3 = vcmp.eq.s32.totalorder %v1472_v32, %v763_v61 }
 0x228   :  { %v767_v3 = vsel %vm765_vm3, %v731_v30, 0.0 }
 0x230   :  { %v1160_v56 = vpop.eup %1159 }
 0x231   :  { %746 = vadd.xlane.f32.xlu0 %v1160_v56 }
 0x234   :  { %v1162_v62 = vpop.eup %1161 }
 0x235   :  { %748 = vadd.xlane.f32.xlu1 %v1162_v62  ;;  %768 = vadd.xlane.f32.xlu0 %v766_v2 }
 0x239   :  { %770 = vadd.xlane.f32.xlu0 %v767_v3 }
 0x2ba   :  { %v747_v4 = vpop.xlane.xlu0 %746 }
 0x2bb   :  { %1163 = vlog2.f32 %v747_v4 }
 0x2be   :  { %v749_v11 = vpop.xlane.xlu1 %748  ;;  %v769_v33 = vpop.xlane.xlu0 %768 }
 0x2bf   :  { %1165 = vlog2.f32 %v749_v11 }
 0x2c2   :  { %v771_v46 = vpop.xlane.xlu0 %770 }
 0x2c8   :  { %v1164_v15 = vpop.eup %1163 }
 0x2c9   :  { %v751_v16 = vmul.f32 0.6931472, %v1164_v15 }
 0x2cb   :  { %v754_v34 = vadd.f32 %v751_v16, %v737_v47 }
 0x2cc   :  { %v1166_v37 = vpop.eup %1165 }
 0x2cd   :  { %v753_v40 = vmul.f32 0.6931472, %v1166_v37  ;;  %v780_v41 = vsub.f32 %v754_v34, %v769_v33 }
 0x2cf   :  { %v755_v45 = vadd.f32 %v753_v40, %v739_v51  ;;  %v785_v59 = vsel %vm784_vm4, %v780_v41, 0.0 }
 0x2d1   :  { %v781_v53 = vsub.f32 %v755_v45, %v771_v46 }
 0x2d3   :  { %v786_v38 = vsel %vm784_vm4, %v781_v53, 0.0 }
 0x2d4   :  { %v787_v39 = vadd.f32 %v786_v38, %v785_v59 }
 0x2d6   :  { %788 = vadd.xlane.f32.xlu0 %v787_v39 }
 0x2d7   :  { %1178 = shalt.err (!%p1175_p4)
}
 0x2d8   :  { %s1193_s29 = smov 128   ;;  %s1194_s30 = smov 8   ;;  %v773_v0 = vshrl.u32 %v20_v28, 7  ;;  %vm798_vm6 = vcmp.eq.s32.totalorder %v1472_v32, 0 }
 0x2d9   :  { %814 = dma.vmem_to_hbm [thread:$0]  %s809_s27, 256, %s1659_s3, [#allocation3], %s1193_s29, %s1193_s29, %s1194_s30  }
 0x2da   :  { %vm797_vm5 = vcmp.eq.s32.totalorder %v773_v0, 0 }
 0x2db   :  { %vm799_vm7 = vmand %vm797_vm5, %vm798_vm6 }
 0x35f   :  { %v789_v42 = vpop.xlane.xlu0 %788 }
 0x360   :  { %v790_v43 = vrot.slane %v789_v42, 4 }
 0x362   :  { %v791_v50 = vadd.f32 %v790_v43, %v789_v42 }
 0x364   :  { %v792_v52 = vrot.slane %v791_v50, 2 }
 0x366   :  { %v793_v57 = vadd.f32 %v792_v52, %v791_v50 }
 0x368   :  { %v794_v58 = vrot.slane %v793_v57, 1 }
 0x36a   :  { %v795_v63 = vadd.f32 %v794_v58, %v793_v57 }
 0x36c   :  { %1149 = vpush %v795_v63 }
 0x39d   :  { %s1150_s7 = spop %1149 }
 0x39e   :  { %v800_v1 = vstv %s1150_s7 }
 0x39f   :  { %v801_v8 = vsel %vm799_vm7, %v800_v1, 0.0 }
 0x3a0   :  { %802 = vst [vmem:[%s1660_s4] sm:$0xff] %v801_v8 }
 0x3a1   :  { %1187 = dma.done.wait [#allocation3], 256  }
 0x3a2   :  { %1188 = vsyncadd [#allocation3], 4294967040 }
 0x3a3   :  { %822 = vsyncpa [#allocation3], 1 }

</bundles_post_ra>
